<compile_context>
chip_gen: v7x
topology: tpu7x:2x2x1
jax: 0.10.0
libtpu: 0.0.40
codegen_flags: <defaults>
</compile_context>

<pallas_src>
import jax
import jax.numpy as jnp
from jax.experimental import pallas as pl
from jax.experimental.pallas import tpu as pltpu

# ----- small, module-consistent sizes (module defaults: L=1800, Cin=1, 6 labels) -----
BATCH = 2
C_IN = 1          # input_channel
L = 64            # input_size (must be divisible by 8)
NUM_LABEL = 6

C1, C2, C3, C4 = 64, 128, 256, 128
C_OUT_PAD = 128   # lane-padded FC output width


def default_use_bf16_activations():
    """bf16 inter-layer activations only on bf16-native VPUs (v6e / v7x)."""
    try:
        kind = jax.devices()[0].device_kind.lower()
    except Exception:
        return False
    return ("v6" in kind) or ("v7" in kind)


def _choose_b_tile(B, Ln):
    """Pick how many batch elements to fold per grid step.

    Priorities (per perf review):
      1) n_tiles >= 2 whenever B >= 2 (v7x megacore + DMA/compute overlap),
      2) M = b_tile * Ln stays at or below ~8192 rows,
      3) M % 64 == 0 (all three pool-slice boundaries sublane aligned),
      4) largest M under the cap.
    """
    cands = [c for c in range(1, B + 1) if B % c == 0]
    if B >= 2:
        cands = [c for c in cands if B // c >= 2]

    def key(c):
        M = c * Ln
        return (M <= 8192,                  # prefer staying under the M cap
                M % 64 == 0,                # prefer aligned pool boundaries
                M if M <= 8192 else -M)     # biggest M under cap / smallest above
    return max(cands, key=key)


def prepare_params(params):
    """One-time weight prep: bf16 casts for MXU operands, f32 biases, FC lane-pad."""
    (w1, b1, w2, b2, w3, b3, w4, b4, wfc, bfc) = params
    f32, bf16 = jnp.float32, jnp.bfloat16
    num_label = wfc.shape[1]
    wfc_p = jnp.zeros((wfc.shape[0], C_OUT_PAD), f32).at[:, :num_label].set(wfc).astype(bf16)
    bfc_p = jnp.zeros((1, C_OUT_PAD), f32).at[:, :num_label].set(bfc.reshape(1, -1))
    return dict(
        w1=w1.astype(f32), b1=b1.reshape(1, -1).astype(f32),
        w2=w2.astype(bf16), b2=b2.reshape(1, -1).astype(f32),
        w3=w3.astype(bf16), b3=b3.reshape(1, -1).astype(f32),
        w4=w4.astype(bf16), b4=b4.reshape(1, -1).astype(f32),
        wfc=wfc_p, bfc=bfc_p, num_label=num_label,
    )


def cnn_forward(x_ncl, prepped, use_bf16_act=None):
    """x_ncl: (B, C_IN, L) float32 (NCL, as PyTorch). Returns (B, NUM_LABEL) float32."""
    if use_bf16_act is None:
        use_bf16_act = default_use_bf16_activations()

    B, Cin, Ln = x_ncl.shape
    assert Ln % 8 == 0, "input_size must be divisible by 8 (three AvgPool1d(2) stages)"
    num_label = prepped["num_label"]

    b_tile = _choose_b_tile(B, Ln)
    n_tiles = B // b_tile
    M = b_tile * Ln
    L8 = Ln // 8
    act_dtype = jnp.bfloat16 if use_bf16_act else jnp.float32

    # ---- per-call layout prep: only the input permutation runs per forward ----
    # NCL -> (B, L, Cin) so channels sit on the lane axis, then re-order the fused
    # (batch, length) rows by (bit0(p), bit1(p), bit2(p), b, p//8): every
    # AvgPool1d(2) stage becomes "(rows[:M/2] + rows[M/2:]) * 0.5" and after the
    # third stage rows are back in (batch-major, natural) order.  k=1 convs are
    # pointwise, so the permutation does not affect them.
    x_blc = jnp.transpose(x_ncl, (0, 2, 1)).astype(jnp.float32)
    x_r = x_blc.reshape(n_tiles, b_tile, L8, 2, 2, 2, Cin)   # [t, b, q, b2, b1, b0, c]
    x_r = jnp.transpose(x_r, (0, 5, 4, 3, 1, 2, 6))          # [t, b0, b1, b2, b, q, c]
    x_fused = x_r.reshape(n_tiles, M, Cin)

    w1f, b1f = prepped["w1"], prepped["b1"]
    w2b, b2f = prepped["w2"], prepped["b2"]
    w3b, b3f = prepped["w3"], prepped["b3"]
    w4b, b4f = prepped["w4"], prepped["b4"]
    wfc_p, bfc_p = prepped["wfc"], prepped["bfc"]

    # ---- the kernel (closure over b_tile / L8 / Cin / act_dtype) ----
    def kernel(x_ref, w1_ref, b1_ref, w2_ref, b2_ref,
               w3_ref, b3_ref, w4_ref, b4_ref, wfc_ref, bfc_ref, out_ref):
        x = x_ref[0]                                              # (M, Cin) f32

        # conv1 (k=1). With Cin == 1 a K=1 matmul would waste the MXU systolic
        # depth, so do it as a VPU broadcast outer product.
        if Cin == 1:
            h = x * w1_ref[...]                                   # (M,1)*(1,C1) -> (M,C1)
        else:
            h = jnp.dot(x, w1_ref[...], preferred_element_type=jnp.float32)
        h = jnp.maximum(h + b1_ref[...], 0.0).astype(act_dtype)   # (M, C1)

        def pool_halves(z):                                       # AvgPool1d(2)
            m = z.shape[0]
            return (z[: m // 2, :] + z[m // 2:, :]) * 0.5

        def conv_relu(z, w_ref, b_ref):                           # k=1 conv == matmul
            y = jnp.dot(z.astype(jnp.bfloat16), w_ref[...],
                        preferred_element_type=jnp.float32)
            return jnp.maximum(y + b_ref[...], 0.0).astype(act_dtype)

        h = conv_relu(pool_halves(h), w2_ref, b2_ref)             # (M/2, C2)
        h = conv_relu(pool_halves(h), w3_ref, b3_ref)             # (M/4, C3)
        h = conv_relu(pool_halves(h), w4_ref, b4_ref)             # (M/8, C4)

        # FC before the global mean (FC is linear => equivalent): a well-filled
        # (M/8)-row MXU matmul instead of a b_tile-row one.
        y = jnp.dot(h.astype(jnp.bfloat16), wfc_ref[...],
                    preferred_element_type=jnp.float32)           # (M/8, 128) f32

        # Global AvgPool over the L/8 positions of each batch element: rows are
        # batch-major/natural, so one reshape + one aligned reduce does it all.
        inv = 1.0 / float(L8)
        pooled = jnp.sum(y.reshape(b_tile, L8, C_OUT_PAD), axis=1) * inv  # (b_tile, 128)
        out_ref[0] = pooled + bfc_ref[...]

    def full(a):
        nd = a.ndim
        return pl.BlockSpec(a.shape, lambda i: (0,) * nd)

    out = pl.pallas_call(
        kernel,
        out_shape=jax.ShapeDtypeStruct((n_tiles, b_tile, C_OUT_PAD), jnp.float32),
        grid_spec=pltpu.PrefetchScalarGridSpec(
            num_scalar_prefetch=0,
            grid=(n_tiles,),
            in_specs=[
                pl.BlockSpec((1, M, Cin), lambda i: (i, 0, 0)),
                full(w1f), full(b1f), full(w2b), full(b2f),
                full(w3b), full(b3f), full(w4b), full(b4f),
                full(wfc_p), full(bfc_p),
            ],
            out_specs=pl.BlockSpec((1, b_tile, C_OUT_PAD), lambda i: (i, 0, 0)),
        ),
        compiler_params=pltpu.CompilerParams(
            dimension_semantics=("parallel",),        # shard batch tiles over TCs
            vmem_limit_bytes=32 * 1024 * 1024),       # headroom for larger M on v5e
    )(x_fused, w1f, b1f, w2b, b2f, w3b, b3f, w4b, b4f, wfc_p, bfc_p)

    return out.reshape(B, C_OUT_PAD)[:, :num_label]


def make_params(key):
    """Deterministic synthetic parameters (shapes match the PyTorch module)."""
    ks = jax.random.split(key, 10)
    def w(k, shape, fan_in):
        return (jax.random.normal(k, shape, jnp.float32) / jnp.sqrt(fan_in)).astype(jnp.float32)
    w1 = w(ks[0], (C_IN, C1), C_IN);     b1 = w(ks[1], (1, C1), C_IN)
    w2 = w(ks[2], (C1, C2), C1);         b2 = w(ks[3], (1, C2), C1)
    w3 = w(ks[4], (C2, C3), C2);         b3 = w(ks[5], (1, C3), C2)
    w4 = w(ks[6], (C3, C4), C3);         b4 = w(ks[7], (1, C4), C3)
    wfc = w(ks[8], (C4, NUM_LABEL), C4); bfc = w(ks[9], (1, NUM_LABEL), C4)
    return (w1, b1, w2, b2, w3, b3, w4, b4, wfc, bfc)


def cnn_reference(x_ncl, params):
    """Pure-f32 JAX reference of the PyTorch forward (module semantics)."""
    (w1, b1, w2, b2, w3, b3, w4, b4, wfc, bfc) = params
    h = jnp.transpose(x_ncl, (0, 2, 1))                   # (B, L, C)
    def pool2(z):
        B, Ln, C = z.shape
        return z.reshape(B, Ln // 2, 2, C).mean(axis=2)
    h = pool2(jax.nn.relu(h @ w1 + b1))
    h = pool2(jax.nn.relu(h @ w2 + b2))
    h = pool2(jax.nn.relu(h @ w3 + b3))
    h = jax.nn.relu(h @ w4 + b4).mean(axis=1)             # global avg pool
    return h @ wfc + bfc


def cnn_reference_mixed(x_ncl, params, use_bf16_act):
    """Mirrors the kernel's mixed-precision arithmetic (bf16 dots + optional bf16
    activations, f32 accumulation, FC applied before the global mean)."""
    (w1, b1, w2, b2, w3, b3, w4, b4, wfc, bfc) = params
    f32, bf16 = jnp.float32, jnp.bfloat16
    act = bf16 if use_bf16_act else f32

    x = jnp.transpose(x_ncl, (0, 2, 1)).astype(f32)       # (B, L, Cin)

    def pool2(z):                                          # AvgPool1d(2): same pairs, same FP op
        B, Ln, C = z.shape
        zr = z.reshape(B, Ln // 2, 2, C)
        return (zr[:, :, 0, :] + zr[:, :, 1, :]) * 0.5

    def conv_relu(z, w, b):
        y = jnp.matmul(z.astype(bf16), w.astype(bf16), preferred_element_type=f32)
        return jnp.maximum(y + b.reshape(1, 1, -1), 0.0).astype(act)

    if w1.shape[0] == 1:
        h = x * w1.astype(f32)                             # conv1 VPU broadcast path
    else:
        h = jnp.matmul(x, w1.astype(f32), preferred_element_type=f32)
    h = jnp.maximum(h + b1.reshape(1, 1, -1), 0.0).astype(act)

    h = conv_relu(pool2(h), w2, b2)
    h = conv_relu(pool2(h), w3, b3)
    h = conv_relu(pool2(h), w4, b4)
    y = jnp.matmul(h.astype(bf16), wfc.astype(bf16), preferred_element_type=f32)
    L8 = y.shape[1]
    return jnp.sum(y, axis=1) * (1.0 / float(L8)) + bfc.reshape(1, -1)


if __name__ == "__main__":
    key = jax.random.PRNGKey(0)
    kx, kp = jax.random.split(key)
    x = jax.random.normal(kx, (BATCH, C_IN, L), jnp.float32)   # NCL, like PyTorch
    params = make_params(kp)

    use_bf16_act = default_use_bf16_activations()
    prepped = prepare_params(params)                           # hoisted, once per model

    out = jax.block_until_ready(cnn_forward(x, prepped, use_bf16_act))
    assert out.shape == (BATCH, NUM_LABEL)

    # Tight check against a reference mirroring the kernel's exact mixed-precision
    # arithmetic, loose check against the pure-f32 module semantics.
    ref_mixed = cnn_reference_mixed(x, params, use_bf16_act)
    ref_f32 = cnn_reference(x, params)
    assert jnp.allclose(out, ref_mixed, atol=2e-3, rtol=2e-3)
    assert jnp.allclose(out, ref_f32, atol=8e-2, rtol=8e-2)
    print("KERNEL_OK")
</pallas_src>

<mosaic_0001>
module attributes {stable_mosaic.version = 11 : i64} {
  func.func @kernel(%arg0: i32, %arg1: memref<1x64x1xf32, #tpu.memory_space<vmem>>, %arg2: memref<1x64xf32, #tpu.memory_space<vmem>>, %arg3: memref<1x64xf32, #tpu.memory_space<vmem>>, %arg4: memref<64x128xbf16, #tpu.memory_space<vmem>>, %arg5: memref<1x128xf32, #tpu.memory_space<vmem>>, %arg6: memref<128x256xbf16, #tpu.memory_space<vmem>>, %arg7: memref<1x256xf32, #tpu.memory_space<vmem>>, %arg8: memref<256x128xbf16, #tpu.memory_space<vmem>>, %arg9: memref<1x128xf32, #tpu.memory_space<vmem>>, %arg10: memref<128x128xbf16, #tpu.memory_space<vmem>>, %arg11: memref<1x128xf32, #tpu.memory_space<vmem>>, %arg12: memref<1x1x128xf32, #tpu.memory_space<vmem>>) attributes {dimension_semantics = [#tpu.dimension_semantics<parallel>], iteration_bounds = array<i64: 2>, scalar_prefetch = 0 : i64, scratch_operands = 0 : i64, tpu.core_type = #tpu.core_type<tc>, window_params = [{transform_indices = @transform_0, window_bounds = array<i64: 1, 64, 1>}, {pipeline_mode = #tpu.pipeline_mode<synchronous>, transform_indices = @transform_1, window_bounds = array<i64: 1, 64>}, {pipeline_mode = #tpu.pipeline_mode<synchronous>, transform_indices = @transform_2, window_bounds = array<i64: 1, 64>}, {pipeline_mode = #tpu.pipeline_mode<synchronous>, transform_indices = @transform_3, window_bounds = array<i64: 64, 128>}, {pipeline_mode = #tpu.pipeline_mode<synchronous>, transform_indices = @transform_4, window_bounds = array<i64: 1, 128>}, {pipeline_mode = #tpu.pipeline_mode<synchronous>, transform_indices = @transform_5, window_bounds = array<i64: 128, 256>}, {pipeline_mode = #tpu.pipeline_mode<synchronous>, transform_indices = @transform_6, window_bounds = array<i64: 1, 256>}, {pipeline_mode = #tpu.pipeline_mode<synchronous>, transform_indices = @transform_7, window_bounds = array<i64: 256, 128>}, {pipeline_mode = #tpu.pipeline_mode<synchronous>, transform_indices = @transform_8, window_bounds = array<i64: 1, 128>}, {pipeline_mode = #tpu.pipeline_mode<synchronous>, transform_indices = @transform_9, window_bounds = array<i64: 128, 128>}, {pipeline_mode = #tpu.pipeline_mode<synchronous>, transform_indices = @transform_10, window_bounds = array<i64: 1, 128>}, {transform_indices = @transform_11, window_bounds = array<i64: 1, 1, 128>}]} {
    %c0 = arith.constant 0 : index
    %c0_0 = arith.constant 0 : index
    %c0_1 = arith.constant 0 : index
    %0 = vector.load %arg1[%c0, %c0_0, %c0_1] : memref<1x64x1xf32, #tpu.memory_space<vmem>>, vector<1x64x1xf32>
    %1 = vector.shape_cast %0 : vector<1x64x1xf32> to vector<64x1xf32>
    %c0_2 = arith.constant 0 : index
    %c0_3 = arith.constant 0 : index
    %2 = vector.load %arg2[%c0_2, %c0_3] : memref<1x64xf32, #tpu.memory_space<vmem>>, vector<1x64xf32>
    %3 = vector.broadcast %1 : vector<64x1xf32> to vector<64x64xf32>
    %4 = vector.broadcast %2 : vector<1x64xf32> to vector<64x64xf32>
    %5 = arith.mulf %3, %4 : vector<64x64xf32>
    %c0_4 = arith.constant 0 : index
    %c0_5 = arith.constant 0 : index
    %6 = vector.load %arg3[%c0_4, %c0_5] : memref<1x64xf32, #tpu.memory_space<vmem>>, vector<1x64xf32>
    %7 = vector.broadcast %6 : vector<1x64xf32> to vector<64x64xf32>
    %8 = arith.addf %5, %7 : vector<64x64xf32>
    %cst = arith.constant 0.000000e+00 : f32
    %9 = vector.broadcast %cst : f32 to vector<64x64xf32>
    %10 = arith.maximumf %8, %9 : vector<64x64xf32>
    %11 = vector.extract_strided_slice %10 {offsets = [0, 0], sizes = [32, 64], strides = [1, 1]} : vector<64x64xf32> to vector<32x64xf32>
    %12 = vector.extract_strided_slice %10 {offsets = [32, 0], sizes = [32, 64], strides = [1, 1]} : vector<64x64xf32> to vector<32x64xf32>
    %13 = arith.addf %11, %12 : vector<32x64xf32>
    %cst_6 = arith.constant 5.000000e-01 : f32
    %14 = vector.broadcast %cst_6 : f32 to vector<32x64xf32>
    %15 = arith.mulf %13, %14 : vector<32x64xf32>
    %16 = arith.truncf %15 : vector<32x64xf32> to vector<32x64xbf16>
    %c0_7 = arith.constant 0 : index
    %c0_8 = arith.constant 0 : index
    %17 = vector.load %arg4[%c0_7, %c0_8] : memref<64x128xbf16, #tpu.memory_space<vmem>>, vector<64x128xbf16>
    %cst_9 = arith.constant dense<0.000000e+00> : vector<32x128xf32>
    %18 = tpu.matmul %16, %17, %cst_9 {dimension_numbers = #tpu.dot_dimension_numbers<[1], [0], [0], [1], [0, 0, 1, 1], [], []>} : vector<32x64xbf16>, vector<64x128xbf16>, vector<32x128xf32> -> vector<32x128xf32>
    %c0_10 = arith.constant 0 : index
    %c0_11 = arith.constant 0 : index
    %19 = vector.load %arg5[%c0_10, %c0_11] : memref<1x128xf32, #tpu.memory_space<vmem>>, vector<1x128xf32>
    %20 = vector.broadcast %19 : vector<1x128xf32> to vector<32x128xf32>
    %21 = arith.addf %18, %20 : vector<32x128xf32>
    %cst_12 = arith.constant 0.000000e+00 : f32
    %22 = vector.broadcast %cst_12 : f32 to vector<32x128xf32>
    %23 = arith.maximumf %21, %22 : vector<32x128xf32>
    %24 = vector.extract_strided_slice %23 {offsets = [0, 0], sizes = [16, 128], strides = [1, 1]} : vector<32x128xf32> to vector<16x128xf32>
    %25 = vector.extract_strided_slice %23 {offsets = [16, 0], sizes = [16, 128], strides = [1, 1]} : vector<32x128xf32> to vector<16x128xf32>
    %26 = arith.addf %24, %25 : vector<16x128xf32>
    %cst_13 = arith.constant 5.000000e-01 : f32
    %27 = vector.broadcast %cst_13 : f32 to vector<16x128xf32>
    %28 = arith.mulf %26, %27 : vector<16x128xf32>
    %29 = arith.truncf %28 : vector<16x128xf32> to vector<16x128xbf16>
    %c0_14 = arith.constant 0 : index
    %c0_15 = arith.constant 0 : index
    %30 = vector.load %arg6[%c0_14, %c0_15] : memref<128x256xbf16, #tpu.memory_space<vmem>>, vector<128x256xbf16>
    %cst_16 = arith.constant dense<0.000000e+00> : vector<16x256xf32>
    %31 = tpu.matmul %29, %30, %cst_16 {dimension_numbers = #tpu.dot_dimension_numbers<[1], [0], [0], [1], [0, 0, 1, 1], [], []>} : vector<16x128xbf16>, vector<128x256xbf16>, vector<16x256xf32> -> vector<16x256xf32>
    %c0_17 = arith.constant 0 : index
    %c0_18 = arith.constant 0 : index
    %32 = vector.load %arg7[%c0_17, %c0_18] : memref<1x256xf32, #tpu.memory_space<vmem>>, vector<1x256xf32>
    %33 = vector.broadcast %32 : vector<1x256xf32> to vector<16x256xf32>
    %34 = arith.addf %31, %33 : vector<16x256xf32>
    %cst_19 = arith.constant 0.000000e+00 : f32
    %35 = vector.broadcast %cst_19 : f32 to vector<16x256xf32>
    %36 = arith.maximumf %34, %35 : vector<16x256xf32>
    %37 = vector.extract_strided_slice %36 {offsets = [0, 0], sizes = [8, 256], strides = [1, 1]} : vector<16x256xf32> to vector<8x256xf32>
    %38 = vector.extract_strided_slice %36 {offsets = [8, 0], sizes = [8, 256], strides = [1, 1]} : vector<16x256xf32> to vector<8x256xf32>
    %39 = arith.addf %37, %38 : vector<8x256xf32>
    %cst_20 = arith.constant 5.000000e-01 : f32
    %40 = vector.broadcast %cst_20 : f32 to vector<8x256xf32>
    %41 = arith.mulf %39, %40 : vector<8x256xf32>
    %42 = arith.truncf %41 : vector<8x256xf32> to vector<8x256xbf16>
    %c0_21 = arith.constant 0 : index
    %c0_22 = arith.constant 0 : index
    %43 = vector.load %arg8[%c0_21, %c0_22] : memref<256x128xbf16, #tpu.memory_space<vmem>>, vector<256x128xbf16>
    %cst_23 = arith.constant dense<0.000000e+00> : vector<8x128xf32>
    %44 = tpu.matmul %42, %43, %cst_23 {dimension_numbers = #tpu.dot_dimension_numbers<[1], [0], [0], [1], [0, 0, 1, 1], [], []>} : vector<8x256xbf16>, vector<256x128xbf16>, vector<8x128xf32> -> vector<8x128xf32>
    %c0_24 = arith.constant 0 : index
    %c0_25 = arith.constant 0 : index
    %45 = vector.load %arg9[%c0_24, %c0_25] : memref<1x128xf32, #tpu.memory_space<vmem>>, vector<1x128xf32>
    %46 = vector.broadcast %45 : vector<1x128xf32> to vector<8x128xf32>
    %47 = arith.addf %44, %46 : vector<8x128xf32>
    %cst_26 = arith.constant 0.000000e+00 : f32
    %48 = vector.broadcast %cst_26 : f32 to vector<8x128xf32>
    %49 = arith.maximumf %47, %48 : vector<8x128xf32>
    %50 = arith.truncf %49 : vector<8x128xf32> to vector<8x128xbf16>
    %c0_27 = arith.constant 0 : index
    %c0_28 = arith.constant 0 : index
    %51 = vector.load %arg10[%c0_27, %c0_28] : memref<128x128xbf16, #tpu.memory_space<vmem>>, vector<128x128xbf16>
    %cst_29 = arith.constant dense<0.000000e+00> : vector<8x128xf32>
    %52 = tpu.matmul %50, %51, %cst_29 {dimension_numbers = #tpu.dot_dimension_numbers<[1], [0], [0], [1], [0, 0, 1, 1], [], []>} : vector<8x128xbf16>, vector<128x128xbf16>, vector<8x128xf32> -> vector<8x128xf32>
    %53 = vector.shape_cast %52 : vector<8x128xf32> to vector<1x8x128xf32>
    %cst_30 = arith.constant dense<0.000000e+00> : vector<1x128xf32>
    %54 = vector.multi_reduction <add>, %53, %cst_30 [1] : vector<1x8x128xf32> to vector<1x128xf32>
    %cst_31 = arith.constant 1.250000e-01 : f32
    %55 = vector.broadcast %cst_31 : f32 to vector<1x128xf32>
    %56 = arith.mulf %54, %55 : vector<1x128xf32>
    %c0_32 = arith.constant 0 : index
    %c0_33 = arith.constant 0 : index
    %57 = vector.load %arg11[%c0_32, %c0_33] : memref<1x128xf32, #tpu.memory_space<vmem>>, vector<1x128xf32>
    %58 = arith.addf %56, %57 : vector<1x128xf32>
    %c0_34 = arith.constant 0 : index
    %c0_35 = arith.constant 0 : index
    %c0_36 = arith.constant 0 : index
    %59 = vector.load %arg12[%c0_34, %c0_35, %c0_36] : memref<1x1x128xf32, #tpu.memory_space<vmem>>, vector<1x1x128xf32>
    %60 = vector.shape_cast %59 : vector<1x1x128xf32> to vector<1x128xf32>
    %61 = vector.shape_cast %58 : vector<1x128xf32> to vector<1x1x128xf32>
    tpu.vector_store %arg12[%c0_34, %c0_35, %c0_36], %61 {strides = array<i32>} : memref<1x1x128xf32, #tpu.memory_space<vmem>>, vector<1x1x128xf32>,
    return
  }
  func.func @transform_0(%arg0: i32) -> (i32, i32, i32) {
    %c0_i32 = arith.constant 0 : i32
    %c0_i32_0 = arith.constant 0 : i32
    %c0_i32_1 = arith.constant 0 : i32
    return %arg0, %c0_i32, %c0_i32_0 : i32, i32, i32
  }
  func.func @transform_1(%arg0: i32) -> (i32, i32) {
    %c0_i32 = arith.constant 0 : i32
    %c0_i32_0 = arith.constant 0 : i32
    %c0_i32_1 = arith.constant 0 : i32
    return %c0_i32, %c0_i32_0 : i32, i32
  }
  func.func @transform_2(%arg0: i32) -> (i32, i32) {
    %c0_i32 = arith.constant 0 : i32
    %c0_i32_0 = arith.constant 0 : i32
    %c0_i32_1 = arith.constant 0 : i32
    return %c0_i32, %c0_i32_0 : i32, i32
  }
  func.func @transform_3(%arg0: i32) -> (i32, i32) {
    %c0_i32 = arith.constant 0 : i32
    %c0_i32_0 = arith.constant 0 : i32
    %c0_i32_1 = arith.constant 0 : i32
    return %c0_i32, %c0_i32_0 : i32, i32
  }
  func.func @transform_4(%arg0: i32) -> (i32, i32) {
    %c0_i32 = arith.constant 0 : i32
    %c0_i32_0 = arith.constant 0 : i32
    %c0_i32_1 = arith.constant 0 : i32
    return %c0_i32, %c0_i32_0 : i32, i32
  }
  func.func @transform_5(%arg0: i32) -> (i32, i32) {
    %c0_i32 = arith.constant 0 : i32
    %c0_i32_0 = arith.constant 0 : i32
    %c0_i32_1 = arith.constant 0 : i32
    return %c0_i32, %c0_i32_0 : i32, i32
  }
  func.func @transform_6(%arg0: i32) -> (i32, i32) {
    %c0_i32 = arith.constant 0 : i32
    %c0_i32_0 = arith.constant 0 : i32
    %c0_i32_1 = arith.constant 0 : i32
    return %c0_i32, %c0_i32_0 : i32, i32
  }
  func.func @transform_7(%arg0: i32) -> (i32, i32) {
    %c0_i32 = arith.constant 0 : i32
    %c0_i32_0 = arith.constant 0 : i32
    %c0_i32_1 = arith.constant 0 : i32
    return %c0_i32, %c0_i32_0 : i32, i32
  }
  func.func @transform_8(%arg0: i32) -> (i32, i32) {
    %c0_i32 = arith.constant 0 : i32
    %c0_i32_0 = arith.constant 0 : i32
    %c0_i32_1 = arith.constant 0 : i32
    return %c0_i32, %c0_i32_0 : i32, i32
  }
  func.func @transform_9(%arg0: i32) -> (i32, i32) {
    %c0_i32 = arith.constant 0 : i32
    %c0_i32_0 = arith.constant 0 : i32
    %c0_i32_1 = arith.constant 0 : i32
    return %c0_i32, %c0_i32_0 : i32, i32
  }
  func.func @transform_10(%arg0: i32) -> (i32, i32) {
    %c0_i32 = arith.constant 0 : i32
    %c0_i32_0 = arith.constant 0 : i32
    %c0_i32_1 = arith.constant 0 : i32
    return %c0_i32, %c0_i32_0 : i32, i32
  }
  func.func @transform_11(%arg0: i32) -> (i32, i32, i32) {
    %c0_i32 = arith.constant 0 : i32
    %c0_i32_0 = arith.constant 0 : i32
    %c0_i32_1 = arith.constant 0 : i32
    return %arg0, %c0_i32, %c0_i32_0 : i32, i32, i32
  }
}

</mosaic_0001>

<bundles_post_ra>
// kernel: tpu_custom_call.1
= control target key start
LH: loop header
LB: loop body
LE: loop exit
PB: predicated region body
PF: predicated region fallthrough
CT: control target
= control target key end

     0   :  { %s1944_s0 = inlined_call_operand.vmem [shape: f32[2,64,1], index: 0, kind: input, shape index: {}]   ;;  %s1945_s1 = inlined_call_operand.vmem [shape: f32[1,64], index: 1, kind: input, shape index: {}]   ;;  %s1946_s2 = inlined_call_operand.vmem [shape: f32[1,64], index: 2, kind: input, shape index: {}]   ;;  %s1947_s3 = inlined_call_operand.hbm [shape: bf16[64,128], index: 3, kind: input, shape index: {}]   ;;  %s1948_s4 = inlined_call_operand.vmem [shape: f32[1,128], index: 4, kind: input, shape index: {}]   ;;  %s1949_s5 = inlined_call_operand.vmem [shape: bf16[128,256], index: 5, kind: input, shape index: {}]   ;;  %s1950_s6 = inlined_call_operand.vmem [shape: f32[1,256], index: 6, kind: input, shape index: {}]   ;;  %s1951_s7 = inlined_call_operand.hbm [shape: bf16[256,128], index: 7, kind: input, shape index: {}]   ;;  %s1952_s8 = inlined_call_operand.vmem [shape: f32[1,128], index: 8, kind: input, shape index: {}]   ;;  %s1953_s9 = inlined_call_operand.hbm [shape: bf16[128,128], index: 9, kind: input, shape index: {}]   ;;  %s1954_s10 = inlined_call_operand.vmem [shape: f32[1,128], index: 10, kind: input, shape index: {}]   ;;  %s1955_s11 = inlined_call_operand.hbm [shape: f32[2,1,128], index: 11, kind: output, shape index: {}]  }
   0x1   :  { %1966 = sst [smem:[#allocation18_spill]] %s1955_s11 }
   0x2   :  { %16 = vsyncpa [#allocation3], 0 }
   0x3   :  { %17 = vsyncpa [#allocation6], 0 }
   0x4   :  { %18 = vsyncpa [#allocation4], 0 }
   0x5   :  { %20 = vsyncpa [#allocation4 + $0x1], 0  ;;  %s1669_s17 = smov 0   ;;  %s1671_s18 = smov 0  }
   0x6   :  { %s1673_s19 = smov 0   ;;  %s1675_s20 = smov 0  }
   0x7 LB: > { %1967 = sst [smem:[#allocation12_spill]] %s1586_s17  ;;  %s1690_s21 = sadd.s32 4294967295, %s1598_s20   ;;  %s1598_s20 = sphi %s1675_s20, %s1989_s20   ;;  %s1594_s19 = sphi %s1673_s19, %s1991_s19   ;;  %s1590_s18 = sphi %s1671_s18, %s1993_s18   ;;  %s1586_s17 = sphi %s1669_s17, %s1992_s17  }
   0x8   : > { %1968 = sst [smem:[#allocation13_spill]] %s1594_s19  ;;  %s1180_s22 = sadd.s32 4294967294, %s1598_s20  }
   0x9   : > { %1969 = sst [smem:[#allocation14_spill]] %s1598_s20  ;;  %s1694_s23 = sadd.s32 1, %s1598_s20  }
   0xa   : > { %1970 = sst [smem:[#allocation15_spill]] %s1694_s23  ;;  %s269_s24 = sadd.s32 1, %s1594_s19 }
   0xb   : > { %s266_s25 = ssub.s32 %s1598_s20, %s1694_s23  ;;  %p279_p0 = scmp.ne.s32.totalorder %s1594_s19, %s1590_s18 }
   0xc   : > { %p267_p1 = scmp.eq.s32.totalorder %s266_s25, 0  ;;  %p280_p2 = scmp.eq.s32.totalorder %s1690_s21, 1 }
   0xd   : > { %p285_p3 = scmp.ne.s32.totalorder %s1590_s18, %s1586_s17  ;;  %p286_p4 = scmp.eq.s32.totalorder %s1180_s22, 1 }
   0xe   : > { %s1705_s26 = scalar_select %p267_p1, %s1594_s19, %s269_s24  }
   0xf   : > { %p1707_p5 = por %p280_p2, %p279_p0  ;;  %p1711_p6 = por %p286_p4, %p285_p3 }
  0x10   : > { %1971 = sst [smem:[#allocation16_spill]] %s1705_s26  ;;  %p1181_p7 = scmp.ge.s32.totalorder %s1598_s20, 1 }
  0x11   : > { %s1972_s27 = scalar_select %p1707_p5, 1, 0 }
  0x12   : > { %s1973_s28 = scalar_select %p1711_p6, 1, 0 }
  0x13   : > { %p293_p8 = scmp.lt.s32.totalorder %s1598_s20, 3  ;;  %p1959_p9 = scmp.eq.s32.totalorder %s1690_s21, 0 }
  0x14   : > { %1974 = sst [smem:[#allocation17_spill]] %s1973_s28  ;;  %s1600_s30 = smov [#allocation5]  }
  0x15   : > { %p1718_p10 = pnand %p1181_p7, %p293_p8  ;;  %s333_s12 = sshll.u32 %s1600_s30, 4  ;;  %s1724_s12 = int_to_ptr.vmem [resolvable:$true] %s333_s12 }
  0x16   : > { %s1601_s14 = smov [#allocation2]   ;;  %s1602_s16 = smov [#allocation7]  }
  0x17   : > { %s1975_s29 = scalar_select %p1718_p10, 1, 0 }
  0x18   : > { %p1329_p11 = pneg %p1718_p10  ;;  %s311_s15 = sshll.u32 %s1601_s14, 4  ;;  %s1732_s15 = int_to_ptr.vmem [resolvable:$true] %s311_s15 }
  0x19   : > { %s1734_s22 = sshll.u32 %s1602_s16, 4  ;;  %s1444_s26 = scalar_lea.hbm %s1951_s7, 2048  ;;  %s350_s22 = int_to_ptr.vmem [resolvable:$true] %s1734_s22 }
  0x1a   : > { %p1728_p12 = pnand %p1959_p9, %p1329_p11  ;;  %p1445_p13 = scmp.ne.s32.totalorder %s1951_s7, %s1444_s26 }
  0x1b   : > { %p1451_p3 = scmp.lt.u32.totalorder %s1444_s26, %s1951_s7 }
  0x1c   : > { %p1744_p0 = pneg %p1728_p12 }
  0x1e   : > { %p1447_p1 = pnand %p1744_p0, %p1445_p13 }
  0x20   : > { %p1448_p2 = pneg %p1447_p1 }
  0x22   : > { %p1453_p4 = pnand %p1451_p3, %p1448_p2 }
  0x24   : > { %1456 = shalt.err (!%p1453_p4)
}
  0x25   : > { %s1457_s19 = scalar_lea.vmem %s1724_s12, 2048  ;;  %p1465_p9 = scmp.lt.s32.totalorder %s1724_s12, %s1724_s12 }
  0x26   : > { %p1458_p7 = scmp.ne.s32.totalorder %s1724_s12, %s1457_s19  ;;  %p1466_p6 = scmp.lt.s32.totalorder %s1457_s19, %s1457_s19 }
  0x28   : > { %p1460_p8 = pnand %p1458_p7, %p1744_p0  ;;  %p1467_p13 = por %p1466_p6, %p1465_p9 }
  0x2a   : > { %p1461_p11 = pneg %p1460_p8 }
  0x2c   : > { %p1468_p1 = pnand %p1467_p13, %p1461_p11 }
  0x2e   : > { %1471 = shalt.err (!%p1468_p1)
}
  0x2f   : > { %s1603_s24 = smov 64   ;;  %s1604_s26 = smov 4  }
  0x30   : > { %1335 = dma.hbm_to_vmem [thread:$0]  (!%p1728_p12), %s1951_s7, 2048, %s1724_s12, [#allocation6], %s1603_s24, %s1603_s24, %s1604_s26  }
  0x31   : > { %s1472_s19 = scalar_lea.hbm %s1947_s3, 512 }
  0x32   : > { %p1473_p6 = scmp.ne.s32.totalorder %s1947_s3, %s1472_s19  ;;  %p1479_p3 = scmp.lt.u32.totalorder %s1472_s19, %s1947_s3 }
  0x34   : > { %p1475_p9 = pnand %p1473_p6, %p1744_p0 }
  0x36   : > { %p1476_p2 = pneg %p1475_p9 }
  0x38   : > { %p1481_p4 = pnand %p1479_p3, %p1476_p2 }
  0x3a   : > { %1484 = shalt.err (!%p1481_p4)
}
  0x3b   : > { %s1485_s12 = scalar_lea.vmem %s1732_s15, 512  ;;  %p1493_p13 = scmp.lt.s32.totalorder %s1732_s15, %s1732_s15 }
  0x3c   : > { %p1486_p7 = scmp.ne.s32.totalorder %s1732_s15, %s1485_s12  ;;  %p1494_p1 = scmp.lt.s32.totalorder %s1485_s12, %s1485_s12 }
  0x3e   : > { %p1488_p8 = pnand %p1486_p7, %p1744_p0  ;;  %p1495_p6 = por %p1494_p1, %p1493_p13 }
  0x40   : > { %p1489_p11 = pneg %p1488_p8 }
  0x42   : > { %p1496_p9 = pnand %p1495_p6, %p1489_p11 }
  0x44   : > { %1499 = shalt.err (!%p1496_p9)
}
  0x45   : > { %1332 = dma.hbm_to_vmem [thread:$0]  (!%p1728_p12), %s1947_s3, 512, %s1732_s15, [#allocation3], %s1603_s24, %s1603_s24, %s1604_s26  }
  0x46   : > { %s1500_s25 = scalar_lea.hbm %s1953_s9, 1024 }
  0x47   : > { %p1501_p2 = scmp.ne.s32.totalorder %s1953_s9, %s1500_s25  ;;  %p1507_p7 = scmp.lt.u32.totalorder %s1500_s25, %s1953_s9 }
  0x49   : > { %p1503_p3 = pnand %p1501_p2, %p1744_p0 }
  0x4b   : > { %p1504_p4 = pneg %p1503_p3 }
  0x4d   : > { %p1509_p8 = pnand %p1507_p7, %p1504_p4 }
  0x4f   : > { %1512 = shalt.err (!%p1509_p8)
}
  0x50   : > { %s1513_s12 = scalar_lea.vmem %s350_s22, 1024  ;;  %p1521_p6 = scmp.lt.s32.totalorder %s350_s22, %s350_s22 }
  0x51   : > { %p1514_p11 = scmp.ne.s32.totalorder %s350_s22, %s1513_s12  ;;  %p1522_p9 = scmp.lt.s32.totalorder %s1513_s12, %s1513_s12 }
  0x53   : > { %p1516_p13 = pnand %p1514_p11, %p1744_p0  ;;  %p1523_p5 = por %p1522_p9, %p1521_p6 }
  0x55   : > { %p1517_p1 = pneg %p1516_p13 }
  0x57   : > { %p1524_p10 = pnand %p1523_p5, %p1517_p1 }
  0x59   : > { %1527 = shalt.err (!%p1524_p10)
}
  0x5a   : > { %1338 = dma.hbm_to_vmem [thread:$0]  (!%p1728_p12), %s1953_s9, 1024, %s350_s22, [#allocation6], %s1603_s24, %s1603_s24, %s1604_s26  }
  0x5b   : > { %p1978_p2 = scmp.ne.s32.totalorder %s1975_s29, 0 }
  0x5c   : > { %p1979_p0 = scmp.eq.s32.totalorder (!%p1978_p2), %s1690_s21, 0 }
  0x5d   : > { %376 = sbr.rel (%p1978_p2) target bundleno = 1178 (0x49a), region = 64 }
  0x64   : > { %1573 = dma.done.wait (%p1979_p0), [#allocation3], 512   ;;  %p1980_p3 = pmov %p1979_p0 }
  0x65   : > { %p1981_p5 = pmov %p1979_p0 }
  0x66   : > { %1575 = vsyncadd (%p1980_p3), [#allocation3], 4294966784 }
  0x67   : > { %1577 = dma.done.wait (%p1981_p5), [#allocation6], 3072   ;;  %p1982_p10 = pmov %p1979_p0 }
  0x68   : > { %p423_p4 = scmp.lt.s32.totalorder %s1690_s21, 1  ;;  %v1605_v0 = vmov 0   ;;  %v1392_v7 = vld [vmem:[#allocation2] sm:$0xff]   ;;  %v1393_v10 = vld [vmem:[#allocation2 + $0x8] sm:$0xff]   ;;  %v1394_v11 = vld [vmem:[#allocation2 + $0x10] sm:$0xff]   ;;  %vm564_vm0 = vcmask 523264  }
  0x69   : > { %1579 = vsyncadd (%p1982_p10), [#allocation6], 4294964224  ;;  %1391 = vset.pattern.permute.xlu1 %v1605_v0  ;;  %1390 = vset.pattern.permute.xlu0 %v1605_v0  ;;  %v1395_v12 = vld [vmem:[#allocation2 + $0x18] sm:$0xff]   ;;  %v1396_v13 = vld [vmem:[%s1949_s5 + $0x4] ss:$8 sps:$4 sm:$0xff]   ;;  %vm1607_vm1 = vmmov 0  }
  0x6a   : > { %s424_s23 = scalar_select %p423_p4, %s1690_s21, 1  ;;  %769 = vmatprep.mubr.bf16.mxu1 %v1605_v0  ;;  %1283 = vmatprep.subr.bf16.mxu0 %v1392_v7  ;;  %v1398_v14 = vld [vmem:[%s1949_s5] ss:$8 sps:$4 sm:$0xff]   ;;  %v1399_v15 = vld [vmem:[%s1949_s5 + $0x14] ss:$8 sps:$4 sm:$0xff]  }
  0x6b   : > { %1284 = vmatpush3.bf16.msra.mxu0 %v1392_v7  ;;  %737 = vmatprep.subr.bf16.mxu1 %v1396_v13  ;;  %v1401_v16 = vld [vmem:[%s1949_s5 + $0x10] ss:$8 sps:$4 sm:$0xff]   ;;  %v1402_v17 = vld [vmem:[%s1949_s5 + $0x24] ss:$8 sps:$4 sm:$0xff]   ;;  %v1404_v18 = vld [vmem:[%s1949_s5 + $0x20] ss:$8 sps:$4 sm:$0xff]  }
  0x6c   : > { %s1245_s29 = sshll.u32 %s424_s23, 6  ;;  %1285 = vmatprep.subr.bf16.mxu0 %v1393_v10  ;;  %738 = vmatpush1.bf16.msra.mxu1 %v1398_v14  ;;  %v1405_v19 = vld [vmem:[%s1949_s5 + $0x34] ss:$8 sps:$4 sm:$0xff]   ;;  %v1407_v20 = vld [vmem:[%s1949_s5 + $0x30] ss:$8 sps:$4 sm:$0xff]   ;;  %s421_s19 = sand.u32 1, %s1590_s18  }
  0x6d   : > { %s427_s24 = scalar_lea.vmem %s1944_s0, %s1245_s29  ;;  %739 = vmatprep.subr.bf16.mxu1 %v1399_v15  ;;  %v1408_v21 = vld [vmem:[%s1949_s5 + $0x44] ss:$8 sps:$4 sm:$0xff]   ;;  %v1410_v22 = vld [vmem:[%s1949_s5 + $0x40] ss:$8 sps:$4 sm:$0xff]   ;;  %v1417_v7 = vld [vmem:[%s1949_s5 + $0x74] ss:$8 sps:$4 sm:$0xff]  }
  0x6e   : > { %v433_v1 = vld [vmem:[%s427_s24 + $0x20] sm:$0xff]  ;;  %v434_v3 = vld [vmem:[%s427_s24 + $0x28] sm:$0xff]  ;;  %v432_v5 = vld [vmem:[%s427_s24 + $0x18] sm:$0xff]  ;;  %s1242_s11 = sshll.u32 %s1690_s21, 4  ;;  %s422_s23 = scalar_lea.vmem [#allocation8], %s421_s19 }
  0x6f   : > { %v429_v2 = vld [vmem:[%s427_s24] sm:$0xff]  ;;  %460 = vperm.xlu1 %1391, %v433_v1   ;;  %v430_v4 = vld [vmem:[%s427_s24 + $0x8] sm:$0xff]  ;;  %v431_v6 = vld [vmem:[%s427_s24 + $0x10] sm:$0xff]  ;;  %1286 = vmatpush3.bf16.msra.mxu0 %v1393_v10  ;;  %s1094_s29 = sshll.u32 %s422_s23, 4  ;;  %s1082_s17 = scalar_lea.sflag [#allocation4], %s421_s19  ;;  %s1904_s29 = int_to_ptr.vmem [resolvable:$true] %s1094_s29 }
  0x70   : > { %440 = vperm.xlu0 %1390, %v429_v2   ;;  %v436_v8 = vld [vmem:[%s427_s24 + $0x38] sm:$0xff]  ;;  %v435_v9 = vld [vmem:[%s427_s24 + $0x30] sm:$0xff]  ;;  %1287 = vmatprep.subr.bf16.mxu0 %v1394_v11  ;;  %v1192_v23 = vld [vmem:[%s1945_s1] ss:$0 sm:$0xff]  ;;  %s1983_s24 = sld [smem:[#allocation18_spill]]  ;;  %s1528_s20 = scalar_lea.vmem %s1904_s29, 16 }
  0x71   : > { %740 = vmatpush1.bf16.msra.mxu1 %v1401_v16  ;;  %v1193_v24 = vld [vmem:[%s1946_s2] ss:$0 sm:$0xff]  ;;  %v1424_v13 = vld [vmem:[#allocation5 + $0x50] sm:$0xff]   ;;  %v1426_v15 = vld [vmem:[#allocation5 + $0x58] sm:$0xff]   ;;  %p1529_p12 = scmp.ne.s32.totalorder %s1904_s29, %s1528_s20  ;;  %p1984_p7 = scmp.ne.s32.totalorder %s1972_s27, 0 }
  0x72   : > { %741 = vmatprep.subr.bf16.mxu1 %v1402_v17  ;;  %v1421_v10 = vld [vmem:[#allocation5] sm:$0xff]   ;;  %v1425_v14 = vld [vmem:[#allocation5 + $0x10] sm:$0xff]   ;;  %v1427_v16 = vld [vmem:[#allocation5 + $0x18] sm:$0xff]   ;;  %s1608_s21 = smov [#allocation8]  }
  0x73   : > { %465 = vperm.xlu1 %1391, %v434_v3   ;;  %1288 = vmatpush3.bf16.msra.mxu0 %v1394_v11  ;;  %v1411_v3 = vld [vmem:[%s1949_s5 + $0x54] ss:$8 sps:$4 sm:$0xff]   ;;  %v1422_v11 = vld [vmem:[#allocation5 + $0x48] sm:$0xff]   ;;  %v1428_v17 = vld [vmem:[#allocation5 + $0x60] sm:$0xff]   ;;  %p1530_p8 = pnand %p1529_p12, %p1984_p7  ;;  %s1532_s28 = sshll.u32 %s1608_s21, 4  ;;  %s1533_s28 = int_to_ptr.vmem [resolvable:$false] %s1532_s28 }
  0x74   : > { %445 = vperm.xlu0 %1390, %v430_v4   ;;  %1289 = vmatprep.subr.bf16.mxu0 %v1395_v12  ;;  %v1413_v4 = vld [vmem:[%s1949_s5 + $0x50] ss:$8 sps:$4 sm:$0xff]   ;;  %s1534_s25 = scalar_lea.vmem %s1533_s28, 32  ;;  %p1535_p13 = scmp.lt.s32.totalorder %s1904_s29, %s1533_s28 }
  0x75   : > { %742 = vmatpush1.bf16.msra.mxu1 %v1404_v18  ;;  %v1194_v18 = vld [vmem:[%s1948_s4] ss:$0 sm:$0xff]  ;;  %p1531_p11 = pneg %p1530_p8  ;;  %p1536_p1 = scmp.lt.s32.totalorder %s1534_s25, %s1528_s20 }
  0x76   : > { %743 = vmatprep.subr.bf16.mxu1 %v1405_v19  ;;  %s1902_s26 = scalar_lea.hbm %s1983_s24, %s1242_s11 }
  0x77   : > { %455 = vperm.xlu1 %1391, %v432_v5   ;;  %1290 = vmatpush3.bf16.msra.mxu0 %v1395_v12  ;;  %v1414_v5 = vld [vmem:[%s1949_s5 + $0x64] ss:$8 sps:$4 sm:$0xff]   ;;  %p1537_p6 = por %p1536_p1, %p1535_p13 }
  0x78   : > { %450 = vperm.xlu0 %1390, %v431_v6   ;;  %v1416_v6 = vld [vmem:[%s1949_s5 + $0x60] ss:$8 sps:$4 sm:$0xff]  }
  0x79   : > { %744 = vmatpush1.bf16.msra.mxu1 %v1407_v20  ;;  %v1423_v12 = vld [vmem:[#allocation5 + $0x8] sm:$0xff]   ;;  %p1538_p9 = pnand %p1537_p6, %p1531_p11 }
  0x7a   : > { %745 = vmatprep.subr.bf16.mxu1 %v1408_v21 }
  0x7b   : > { %475 = vperm.xlu1 %1391, %v436_v8   ;;  %v1419_v8 = vld [vmem:[%s1949_s5 + $0x70] ss:$8 sps:$4 sm:$0xff]  }
  0x7c   : > { %470 = vperm.xlu0 %1390, %v435_v9   ;;  %v1420_v9 = vld [vmem:[#allocation5 + $0x40] sm:$0xff]  }
  0x7d   : > { %746 = vmatpush1.bf16.msra.mxu1 %v1410_v22  ;;  %1252 = vmatprep.subr.bf16.mxu0 %v1420_v9 }
  0x7e   : > { %747 = vmatprep.subr.bf16.mxu1 %v1411_v3 }
  0x81   : > { %748 = vmatpush1.bf16.msra.mxu1 %v1413_v4 }
  0x82   : > { %749 = vmatprep.subr.bf16.mxu1 %v1414_v5 }
  0x85   : > { %750 = vmatpush1.bf16.msra.mxu1 %v1416_v6 }
  0x86   : > { %751 = vmatprep.subr.bf16.mxu1 %v1417_v7 }
  0x89   : > { %752 = vmatpush1.bf16.msra.mxu1 %v1419_v8 }
  0xee   : > { %v461_v25 = vpop.permute.xlu1 %460 }
  0xef   : > { %v441_v26 = vpop.permute.xlu0 %440  ;;  %v488_v27 = vmul.f32 %v1192_v23, %v461_v25 }
  0xf0   : > { %v484_v28 = vmul.f32 %v1192_v23, %v441_v26 }
  0xf1   : > { %v503_v29 = vadd.f32 %v1193_v24, %v488_v27 }
  0xf2   : > { %v499_v30 = vadd.f32 %v1193_v24, %v484_v28  ;;  %v466_v31 = vpop.permute.xlu1 %465 }
  0xf3   : > { %v446_v32 = vpop.permute.xlu0 %445  ;;  %v489_v33 = vmul.f32 %v1192_v23, %v466_v31  ;;  %v511_v35 = vmax.f32 %v503_v29, 0.0 }
  0xf4   : > { %v485_v34 = vmul.f32 %v1192_v23, %v446_v32  ;;  %v507_v36 = vmax.f32 %v499_v30, 0.0 }
  0xf5   : > { %v504_v37 = vadd.f32 %v1193_v24, %v489_v33 }
  0xf6   : > { %v500_v38 = vadd.f32 %v1193_v24, %v485_v34  ;;  %v456_v39 = vpop.permute.xlu1 %455  ;;  %v515_v45 = vadd.f32 %v511_v35, %v507_v36  ;;  %v1429_v36 = vld [vmem:[#allocation5 + $0x20] sm:$0xff]  }
  0xf7   : > { %v451_v40 = vpop.permute.xlu0 %450  ;;  %v512_v41 = vmax.f32 %v504_v37, 0.0  ;;  %v487_v43 = vmul.f32 %v1192_v23, %v456_v39  ;;  %v1430_v37 = vld [vmem:[#allocation5 + $0x68] sm:$0xff]   ;;  %v1432_v39 = vld [vmem:[#allocation5 + $0x70] sm:$0xff]  }
  0xf8   : > { %v508_v42 = vmax.f32 %v500_v38, 0.0  ;;  %v486_v44 = vmul.f32 %v1192_v23, %v451_v40  ;;  %v519_v53 = vmul.f32 0.5, %v515_v45  ;;  %v1431_v38 = vld [vmem:[#allocation5 + $0x28] sm:$0xff]   ;;  %v1433_v40 = vld [vmem:[#allocation5 + $0x30] sm:$0xff]  }
  0xf9   : > { %v502_v49 = vadd.f32 %v1193_v24, %v487_v43  ;;  %v1436_v43 = vld [vmem:[#allocation7] sm:$0xff]   ;;  %v1437_v45 = vld [vmem:[#allocation7 + $0x8] sm:$0xff]  }
  0xfa   : > { %v516_v46 = vadd.f32 %v512_v41, %v508_v42  ;;  %v476_v47 = vpop.permute.xlu1 %475  ;;  %v501_v50 = vadd.f32 %v1193_v24, %v486_v44  ;;  %v1434_v41 = vld [vmem:[#allocation5 + $0x78] sm:$0xff]   ;;  %v1606_v44 = vmov 0.0  }
  0xfb   : > { %v471_v48 = vpop.permute.xlu0 %470  ;;  %v491_v51 = vmul.f32 %v1192_v23, %v476_v47  ;;  %v510_v58 = vmax.f32 %v502_v49, 0.0  ;;  %v1435_v42 = vld [vmem:[#allocation5 + $0x38] sm:$0xff]   ;;  %1295 = vmatprep.subr.bf16.mxu1 %v1606_v44  ;;  %v1441_v49 = vld [vmem:[#allocation7 + $0x28] sm:$0xff]  }
  0xfc   : > { %v490_v52 = vmul.f32 %v1192_v23, %v471_v48  ;;  %v520_v54 = vmul.f32 0.5, %v516_v46  ;;  %v509_v59 = vmax.f32 %v501_v50, 0.0  ;;  %v1438_v46 = vld [vmem:[#allocation7 + $0x10] sm:$0xff]   ;;  %v1439_v47 = vld [vmem:[#allocation7 + $0x18] sm:$0xff]   ;;  %v1440_v48 = vld [vmem:[#allocation7 + $0x20] sm:$0xff]   ;;  %v647_v50 = vlaneseq }
  0xfd   : > { %v506_v55 = vadd.f32 %v1193_v24, %v491_v51 }
  0xfe   : > { %v505_v56 = vadd.f32 %v1193_v24, %v490_v52  ;;  %v523_v57 = vpack.c.bf16 %v520_v54, %v519_v53  ;;  %v648_v51 = vshrl.u32 %v647_v50, 7  ;;  %v645_v53 = vld [vmem:[%s1950_s6] sm:$0x3] }
  0xff   : > { %v514_v60 = vmax.f32 %v506_v55, 0.0 }
 0x100   : > { %v513_v61 = vmax.f32 %v505_v56, 0.0  ;;  %1291 = vmatprep.mubr.msk.bf16.mxu0 %vm564_vm0, %v523_v57  ;;  %v649_v52 = vsub.s32 0, %v648_v51  ;;  %v653_v54 = vsub.s32 1, %v648_v51 }
 0x101   : > { %v518_v62 = vadd.f32 %v514_v60, %v510_v58 }
 0x102   : > { %v517_v63 = vadd.f32 %v513_v61, %v509_v59  ;;  %v650_v55 = vrot.slane %v645_v53, %v649_v52  ;;  %v654_v56 = vrot.slane %v645_v53, %v653_v54 }
 0x103   : > { %v522_v0 = vmul.f32 0.5, %v518_v62 }
 0x104   : > { %v521_v1 = vmul.f32 0.5, %v517_v63 }
 0x106   : > { %v524_v2 = vpack.c.bf16 %v522_v0, %v521_v1 }
 0x108   : > { %1292 = vmatmul.mubr.msk.bf16.vlgmr.msra.gmra.mrb[0].mxu0 %vm564_vm0, %v524_v2 }
 0x109   : > { %1253 = vmatpush3.bf16.msra.mxu0 %v1421_v10 }
 0x10a   : > { %1254 = vmatprep.subr.bf16.mxu0 %v1422_v11  ;;  %v1442_v11 = vld [vmem:[#allocation7 + $0x30] sm:$0xff]  }
 0x10d   : > { %1255 = vmatpush3.bf16.msra.mxu0 %v1423_v12  ;;  %v1443_v12 = vld [vmem:[#allocation7 + $0x38] sm:$0xff]  }
 0x10e   : > { %1256 = vmatprep.subr.bf16.mxu0 %v1424_v13 }
 0x111   : > { %1257 = vmatpush3.bf16.msra.mxu0 %v1425_v14  ;;  %v1217_v14 = vld [vmem:[%s1952_s8] ss:$0 sm:$0xff] }
 0x112   : > { %1258 = vmatprep.subr.bf16.mxu0 %v1426_v15 }
 0x115   : > { %1259 = vmatpush3.bf16.msra.mxu0 %v1427_v16 }
 0x116   : > { %1260 = vmatprep.subr.bf16.mxu0 %v1428_v17 }
 0x119   : > { %1261 = vmatpush3.bf16.msra.mxu0 %v1429_v36 }
 0x11a   : > { %1262 = vmatprep.subr.bf16.mxu0 %v1430_v37 }
 0x11d   : > { %1263 = vmatpush3.bf16.msra.mxu0 %v1431_v38 }
 0x11e   : > { %1264 = vmatprep.subr.bf16.mxu0 %v1432_v39 }
 0x121   : > { %1265 = vmatpush3.bf16.msra.mxu0 %v1433_v40 }
 0x122   : > { %1266 = vmatprep.subr.bf16.mxu0 %v1434_v41 }
 0x125   : > { %1267 = vmatpush3.bf16.msra.mxu0 %v1435_v42 }
 0x1db   : > { %v1293_v19 = vpop.f32.mrb[0].mxu0 }
 0x1dc   : > { %v614_v20 = vadd.f32 %v1293_v19, %v1194_v18  ;;  %v605_v21 = vpop.f32.mrb[1].mxu0 }
 0x1dd   : > { %v606_v22 = vadd.f32 %v1194_v18, %v605_v21  ;;  %v1294_v23 = vpop.f32.mrb[2].mxu0 }
 0x1de   : > { %v622_v24 = vmax.f32 %v614_v20, 0.0  ;;  %v617_v25 = vadd.f32 %v1294_v23, %v1194_v18  ;;  %v608_v26 = vpop.f32.mrb[3].mxu0 }
 0x1df   : > { %v620_v27 = vmax.f32 %v606_v22, 0.0  ;;  %v609_v28 = vadd.f32 %v1194_v18, %v608_v26 }
 0x1e0   : > { %v623_v29 = vmax.f32 %v617_v25, 0.0 }
 0x1e1   : > { %v624_v30 = vadd.f32 %v622_v24, %v620_v27  ;;  %v621_v31 = vmax.f32 %v609_v28, 0.0 }
 0x1e3   : > { %v625_v32 = vadd.f32 %v623_v29, %v621_v31  ;;  %v626_v33 = vmul.f32 0.5, %v624_v30 }
 0x1e5   : > { %v627_v34 = vmul.f32 0.5, %v625_v32  ;;  %v1078_v32 = vld [vmem:[%s1954_s10] sm:$0x1] }
 0x1e7   : > { %v628_v35 = vpack.c.bf16 %v627_v34, %v626_v33 }
 0x1e9   : > { %770 = vmatmul.mubr.bf16.vlgmr.msra.gmra.mrb[0].mxu1 %v628_v35 }
 0x1ea   : > { %1296 = vmatpush3.bf16.msra.mxu1 %v1436_v43  ;;  %1311 = vmatprep.mubr.msk.bf16.mxu1 %vm1607_vm1, %v1606_v44 }
 0x1eb   : > { %1297 = vmatprep.subr.bf16.mxu1 %v1606_v44 }
 0x1ee   : > { %1298 = vmatpush3.bf16.msra.mxu1 %v1437_v45 }
 0x1ef   : > { %1299 = vmatprep.subr.bf16.mxu1 %v1606_v44 }
 0x1f2   : > { %1300 = vmatpush3.bf16.msra.mxu1 %v1438_v46 }
 0x1f3   : > { %1301 = vmatprep.subr.bf16.mxu1 %v1606_v44 }
 0x1f6   : > { %1302 = vmatpush3.bf16.msra.mxu1 %v1439_v47 }
 0x1f7   : > { %1303 = vmatprep.subr.bf16.mxu1 %v1606_v44 }
 0x1fa   : > { %1304 = vmatpush3.bf16.msra.mxu1 %v1440_v48 }
 0x1fb   : > { %1305 = vmatprep.subr.bf16.mxu1 %v1606_v44 }
 0x1fe   : > { %1306 = vmatpush3.bf16.msra.mxu1 %v1441_v49 }
 0x1ff   : > { %1307 = vmatprep.subr.bf16.mxu1 %v1606_v44 }
 0x202   : > { %1308 = vmatpush3.bf16.msra.mxu1 %v1442_v11 }
 0x203   : > { %1309 = vmatprep.subr.bf16.mxu1 %v1606_v44 }
 0x206   : > { %1310 = vmatpush3.bf16.msra.mxu1 %v1443_v12 }
 0x2bc   : > { %v771_v57 = vpop.f32.mrb[0].mxu1 }
 0x2bd   : > { %v772_v58 = vadd.f32 %v771_v57, %v650_v55  ;;  %v773_v59 = vpop.f32.mrb[1].mxu1 }
 0x2be   : > { %v774_v60 = vadd.f32 %v773_v59, %v654_v56  ;;  %v775_v61 = vpop.f32.mrb[2].mxu1 }
 0x2bf   : > { %v776_v62 = vadd.f32 %v775_v61, %v650_v55  ;;  %v777_v63 = vpop.f32.mrb[3].mxu1  ;;  %v780_v1 = vmax.f32 %v772_v58, 0.0 }
 0x2c0   : > { %v778_v0 = vadd.f32 %v777_v63, %v654_v56  ;;  %v781_v3 = vmax.f32 %v774_v60, 0.0 }
 0x2c1   : > { %v782_v2 = vmax.f32 %v776_v62, 0.0 }
 0x2c2   : > { %v783_v4 = vmax.f32 %v778_v0, 0.0 }
 0x2c3   : > { %v784_v5 = vadd.f32 %v782_v2, %v780_v1 }
 0x2c4   : > { %v785_v6 = vadd.f32 %v783_v4, %v781_v3 }
 0x2c5   : > { %v786_v7 = vmul.f32 0.5, %v784_v5 }
 0x2c6   : > { %v787_v8 = vmul.f32 0.5, %v785_v6 }
 0x2c7   : > { %v788_v10 = vpack.c.bf16 %v786_v7, %v786_v7 }
 0x2c8   : > { %v789_v9 = vpack.c.bf16 %v787_v8, %v787_v8 }
 0x2ca   : > { %957 = vmatprep.mubr.bf16.mxu0 %v789_v9 }
 0x2cb   : > { %958 = vmatmul.mubr.bf16.vlgmr.msra.gmra.mrb[4].mxu0 %v788_v10 }
 0x39e   : > { %v1268_v13 = vpop.f32.mrb[4].mxu0 }
 0x39f   : > { %v1269_v15 = vpop.f32.mrb[5].mxu0 }
 0x3a0   : > { %v1270_v16 = vadd.f32 %v1269_v15, %v1268_v13  ;;  %v1271_v17 = vpop.f32.mrb[6].mxu0 }
 0x3a1   : > { %v1272_v18 = vpop.f32.mrb[7].mxu0 }
 0x3a2   : > { %v960_v19 = vadd.f32 %v1270_v16, %v1217_v14 }
 0x3a4   : > { %v965_v20 = vmax.f32 %v960_v19, 0.0 }
 0x3a6   : > { %v966_v21 = vpack.c.bf16 %v965_v20, %v965_v20 }
 0x3a8   : > { %1312 = vmatmul.mubr.bf16.vlgmr.msra.gmra.mrb[4].mxu1 %v966_v21 }
 0x47b   : > { %v1065_v22 = vpop.f32.mrb[4].mxu1 }
 0x47c   : > { %v1071_v23 = vrot.slane %v1065_v22, 4  ;;  %v1313_v24 = vpop.f32.mrb[5].mxu1 }
 0x47d   : > { %v1068_v25 = vpop.f32.mrb[6].mxu1 }
 0x47e   : > { %v1072_v26 = vadd.f32 %v1071_v23, %v1065_v22  ;;  %v1314_v27 = vpop.f32.mrb[7].mxu1 }
 0x480   : > { %v1073_v28 = vrot.slane %v1072_v26, 2 }
 0x482   : > { %v1074_v29 = vadd.f32 %v1073_v28, %v1072_v26 }
 0x484   : > { %v1075_v30 = vrot.slane %v1074_v29, 1 }
 0x486   : > { %v1076_v31 = vadd.f32 %v1075_v30, %v1074_v29 }
 0x488   : > { %v1077_v33 = vmul.f32 0.125, %v1076_v31 }
 0x48a   : > { %v1079_v34 = vadd.f32 %v1078_v32, %v1077_v33 }
 0x48c   : > { %1080 = vst [vmem:[%s422_s23] sm:$0x1] %v1079_v34 }
 0x48d   : > { %1541 = shalt.err (!%p1538_p9)
}
 0x48e   : > { %s1542_s30 = scalar_lea.hbm %s1902_s26, 16  ;;  %s1546_s19 = scalar_lea.hbm %s1983_s24, 32 }
 0x48f   : > { %p1543_p2 = scmp.ne.s32.totalorder %s1902_s26, %s1542_s30  ;;  %p1547_p5 = scmp.lt.u32.totalorder %s1902_s26, %s1983_s24 }
 0x490   : > { %p1548_p10 = scmp.lt.u32.totalorder %s1546_s19, %s1542_s30  ;;  %p1550_p12 = scmp.lt.u32.totalorder %s1542_s30, %s1902_s26 }
 0x491   : > { %p1544_p0 = pnand %p1543_p2, %p1984_p7 }
 0x492   : > { %p1549_p4 = por %p1548_p10, %p1547_p5 }
 0x493   : > { %p1545_p3 = pneg %p1544_p0 }
 0x494   : > { %p1551_p8 = por %p1550_p12, %p1549_p4 }
 0x496   : > { %p1552_p11 = pnand %p1551_p8, %p1545_p3 }
 0x498   : > { %1555 = shalt.err (!%p1552_p11)
}
 0x499   : > { %1327 = dma.vmem_to_hbm [thread:$0]  (%p1984_p7), %s1904_s29, 16, %s1902_s26, %s1082_s17  }
 0x49a PF: > { %s1985_s11 = sld [smem:[#allocation14_spill]]  ;;  %s1986_s23 = sld [smem:[#allocation12_spill]] }
 0x49b   : > { %s1987_s13 = sld [smem:[#allocation17_spill]] }
 0x4a0   : > { %p1349_p13 = scmp.ge.s32.totalorder %s1985_s11, 2  ;;  %s1106_s22 = sand.u32 1, %s1986_s23  }
 0x4a1   : > { %p1988_p1 = scmp.ne.s32.totalorder %s1987_s13, 0  ;;  %s1107_s20 = scalar_lea.sflag [#allocation4], %s1106_s22 }
 0x4a3   : > { %p1340_p6 = pnand %p1349_p13, %p1988_p1 }
 0x4a5   : > { %1581 = dma.done.wait (!%p1340_p6), %s1107_s20, 16  }
 0x4a6   : > { %1583 = vsyncadd (!%p1340_p6), %s1107_s20, 4294967280  ;;  %s1989_s20 = sld [smem:[#allocation15_spill]]  ;;  %s1990_s21 = sld [smem:[#allocation13_spill]] }
 0x4a7   : > { %s1991_s19 = sld [smem:[#allocation16_spill]]  ;;  %s1992_s17 = smov %s1590_s18 }
 0x4ac   : > { %p23_p9 = scmp.ge.s32.totalorder %s1989_s20, 4   ;;  %s1993_s18 = smov %s1990_s21 }
 0x4ae   :  { %25 = sbr.rel (!%p23_p9) target bundleno = 7 (0x7), region = 112 }
 0x4b5   :  { %1111 = vsyncpa [#allocation3], 1 }
 0x4b6   :  { %1113 = vsyncpa [#allocation3 + $0x1], 1 }
 0x4b7   :  { %1114 = vsyncpa [#allocation6], 1 }
 0x4b8   :  { %1115 = vsyncpa [#allocation4], 1 }
 0x4b9   :  { %1117 = vsyncpa [#allocation4 + $0x1], 1 }

</bundles_post_ra>
